<compile_context>
chip_gen: v6e
topology: v6e:2x2x1
jax: 0.10.0
libtpu: 0.0.40
codegen_flags: <defaults>
</compile_context>

<pallas_src>
import math

import jax
import jax.numpy as jnp
from jax.experimental import pallas as pl
from jax.experimental.pallas import tpu as pltpu

D_MODEL = 32
N_HEADS = 4
D_K = 8
D_V = 8
DROPOUT_P = 0.1

HDK = N_HEADS * D_K   # 32 (== D_MODEL, required by the reference forward)
HDV = N_HEADS * D_V   # 32


# ---------------------------------------------------------------------------
# Fused kernel: (W_K/sqrt) @ x^T -> softmax -> dropout -> W_V @ . ->
#               (permute + fc) as one block-diagonal matmul + bias.
# All operands are whole-array VMEM blocks; no in-kernel transposes.
# ---------------------------------------------------------------------------
def _mha_fused_kernel(xt_ref, mask_ref, wk_ref, wv_ref, fcb_ref, bias_ref, o_ref):
    # qk^T = (W_K / sqrt(d_model)) @ x^T                       -> (HDK, M)
    qk_t = jnp.dot(wk_ref[...], xt_ref[...], preferred_element_type=jnp.float32)

    # softmax over the head-feature axis (sublane axis here)
    m = jnp.max(qk_t, axis=0, keepdims=True)                   # (1, M)
    e = jnp.exp(qk_t - m)
    denom = jnp.sum(e, axis=0, keepdims=True)                  # (1, M)
    p = e * (1.0 / denom)

    # dropout: precomputed keep/(1-p) multiplier (JAX RNG, outside the kernel)
    p = p * mask_ref[...]

    # attention output, still transposed: W_V @ p               -> (HDV, M)
    out_t = jnp.dot(wv_ref[...], p, preferred_element_type=jnp.float32)

    # fused view/transpose(1,4)/reshape + fc: block-diagonal fc weight turns
    # the whole tail into one lane-dense matmul + bias add.     -> (HDV, G*dm)
    z = jnp.dot(out_t, fcb_ref[...], preferred_element_type=jnp.float32)
    o_ref[...] = (z + bias_ref[...]).astype(o_ref.dtype)


def _mha_fused(xt, mask_t, wk_scaled, w_v, fc_big, fc_b_row):
    dm, m = xt.shape
    gdm = fc_big.shape[1]
    return pl.pallas_call(
        _mha_fused_kernel,
        out_shape=jax.ShapeDtypeStruct((HDV, gdm), jnp.float32),
        grid=(1,),  # toy problem: whole thing fits in one VMEM-resident step
        in_specs=[
            pl.BlockSpec((dm, m), lambda i: (0, 0)),        # x^T
            pl.BlockSpec((HDK, m), lambda i: (0, 0)),       # dropout mask^T
            pl.BlockSpec((HDK, dm), lambda i: (0, 0)),      # W_K / sqrt(dm)
            pl.BlockSpec((HDV, HDK), lambda i: (0, 0)),     # W_V
            pl.BlockSpec((m, gdm), lambda i: (0, 0)),       # block-diag fc weight
            pl.BlockSpec((1, gdm), lambda i: (0, 0)),       # tiled fc bias
        ],
        out_specs=pl.BlockSpec((HDV, gdm), lambda i: (0, 0)),
        compiler_params=pltpu.CompilerParams(
            dimension_semantics=("parallel",)),
    )(xt, mask_t, wk_scaled, w_v, fc_big, fc_b_row)


# ---------------------------------------------------------------------------
# Wrapper (reshape/permute plumbing in plain JAX on the *input* side only)
# ---------------------------------------------------------------------------
def make_dropout_mask(key, m, p=DROPOUT_P):
    """Pre-scaled keep mask in the kernel's (HDK, M) transposed layout."""
    keep = jax.random.bernoulli(key, 1.0 - p, (HDK, m))
    return keep.astype(jnp.float32) / (1.0 - p)


def multi_head_attention_forward(qa, kb, params, dropout_mask_t, attn_mask=None):
    # TODO(synk): attn_mask branch not implemented (reference default is None).
    assert attn_mask is None

    qa2 = qa.reshape((-1,) + qa.shape[2:])        # (AB, C, D, d_model)
    _ = kb.reshape((-1,) + kb.shape[2:])          # kb is reshaped but unused (matches ref)
    ab, c, d, dm = qa2.shape
    m = ab * c * d
    assert dm == D_MODEL and HDK == D_MODEL
    # TODO(synk): general tail (M % HDV != 0) would need cross-chunk handling.
    assert m % HDV == 0, "fused tail requires (A*B*C*D) % (n_heads*d_v) == 0"
    g = m // HDV

    # Input plumbing (cheap XLA): rows in (c, d, ab) order, feature axis first,
    # so every kernel op is a plain matmul and the permute/fc tail fuses.
    xt = jnp.transpose(qa2, (3, 1, 2, 0)).reshape(dm, m)        # (dm, M)

    # Block-diagonal fc weight + tiled bias implement
    # view(1,-1,C,D,HDV).transpose(1,4).reshape(1,-1,HDV) @ fc.W^T inside the kernel.
    fc_big = jnp.kron(jnp.eye(g, dtype=jnp.float32), params["fc_w_t"])  # (M, G*dm)
    fc_b_row = jnp.tile(params["fc_b"].reshape(1, dm), (1, g))          # (1, G*dm)

    o = _mha_fused(xt, dropout_mask_t, params["wk_scaled"], params["w_v"],
                   fc_big, fc_b_row)                                    # (HDV, G*dm)
    return o.reshape(1, m, dm)


# ---------------------------------------------------------------------------
# Parameters (mirror nn.Linear init) and a pure-JAX reference for validation
# ---------------------------------------------------------------------------
def init_params(key):
    k1, k2, k3, k4 = jax.random.split(key, 4)
    bound = 1.0 / math.sqrt(D_MODEL)          # nn.Linear(d_model, ...) bound
    w_k = jax.random.uniform(k1, (HDK, D_MODEL), jnp.float32, -bound, bound)
    w_v = jax.random.uniform(k2, (HDV, D_MODEL), jnp.float32, -bound, bound)
    bound_fc = 1.0 / math.sqrt(HDV)           # nn.Linear(n_heads*d_v, d_model)
    fc_w = jax.random.uniform(k3, (D_MODEL, HDV), jnp.float32, -bound_fc, bound_fc)
    fc_b = jax.random.uniform(k4, (D_MODEL,), jnp.float32, -bound_fc, bound_fc)
    return {
        "w_k": w_k, "w_v": w_v, "fc_w": fc_w, "fc_b": fc_b,
        # kernel-ready layouts (1/sqrt(d_model) folded into W_K)
        "wk_scaled": w_k / math.sqrt(D_MODEL),   # (HDK, dm)
        "fc_w_t": fc_w.T,                        # (HDV, dm)
    }


def reference_forward(qa, kb, params, mask_t):
    """Direct transcription of the PyTorch forward (same dropout mask)."""
    qa2 = qa.reshape((-1,) + qa.shape[2:])
    _ = kb.reshape((-1,) + kb.shape[2:])
    ab, c, d, dm = qa2.shape
    qk = jnp.einsum("bcdm,km->bcdk", qa2, params["w_k"]) / math.sqrt(dm)
    qk = jax.nn.softmax(qk, axis=-1)
    mask4 = jnp.transpose(mask_t.reshape(HDK, c, d, ab), (3, 1, 2, 0))
    qk = qk * mask4
    out = jnp.einsum("bcdk,vk->bcdv", qk, params["w_v"])
    out = out.reshape(1, ab, c, d, HDV)
    out = jnp.transpose(out, (0, 4, 2, 3, 1)).reshape(1, -1, HDV)
    return jnp.einsum("xnh,oh->xno", out, params["fc_w"]) + params["fc_b"]


if __name__ == "__main__":
    key = jax.random.PRNGKey(0)
    kp, kq, kk, kd = jax.random.split(key, 4)
    params = init_params(kp)

    A, B, C, D = 2, 2, 4, 4                   # M = A*B*C*D = 64 rows
    qa = jax.random.normal(kq, (A, B, C, D, D_MODEL), jnp.float32)
    kb = jax.random.normal(kk, (A, B, C, D, D_MODEL), jnp.float32)

    M = A * B * C * D
    mask_t = make_dropout_mask(kd, M)

    out = multi_head_attention_forward(qa, kb, params, mask_t)
    jax.block_until_ready(out)
    assert out.shape == (1, M, D_MODEL), out.shape

    ref = reference_forward(qa, kb, params, mask_t)
    assert float(jnp.max(jnp.abs(out - ref))) < 5e-2, "kernel/reference mismatch"
    print("KERNEL_OK")
</pallas_src>

<mosaic_0001>
module attributes {stable_mosaic.version = 11 : i64} {
  func.func @_mha_fused_kernel(%arg0: i32, %arg1: memref<32x64xf32, #tpu.memory_space<vmem>>, %arg2: memref<32x64xf32, #tpu.memory_space<vmem>>, %arg3: memref<32x32xf32, #tpu.memory_space<vmem>>, %arg4: memref<32x32xf32, #tpu.memory_space<vmem>>, %arg5: memref<64x64xf32, #tpu.memory_space<vmem>>, %arg6: memref<1x64xf32, #tpu.memory_space<vmem>>, %arg7: memref<32x64xf32, #tpu.memory_space<vmem>>) attributes {dimension_semantics = [#tpu.dimension_semantics<parallel>], iteration_bounds = array<i64: 1>, scalar_prefetch = 0 : i64, scratch_operands = 0 : i64, tpu.core_type = #tpu.core_type<tc>, window_params = [{pipeline_mode = #tpu.pipeline_mode<synchronous>, transform_indices = @transform_0, window_bounds = array<i64: 32, 64>}, {pipeline_mode = #tpu.pipeline_mode<synchronous>, transform_indices = @transform_1, window_bounds = array<i64: 32, 64>}, {pipeline_mode = #tpu.pipeline_mode<synchronous>, transform_indices = @transform_2, window_bounds = array<i64: 32, 32>}, {pipeline_mode = #tpu.pipeline_mode<synchronous>, transform_indices = @transform_3, window_bounds = array<i64: 32, 32>}, {pipeline_mode = #tpu.pipeline_mode<synchronous>, transform_indices = @transform_4, window_bounds = array<i64: 64, 64>}, {pipeline_mode = #tpu.pipeline_mode<synchronous>, transform_indices = @transform_5, window_bounds = array<i64: 1, 64>}, {pipeline_mode = #tpu.pipeline_mode<synchronous>, transform_indices = @transform_6, window_bounds = array<i64: 32, 64>}]} {
    %c0 = arith.constant 0 : index
    %c0_0 = arith.constant 0 : index
    %0 = vector.load %arg3[%c0, %c0_0] : memref<32x32xf32, #tpu.memory_space<vmem>>, vector<32x32xf32>
    %c0_1 = arith.constant 0 : index
    %c0_2 = arith.constant 0 : index
    %1 = vector.load %arg1[%c0_1, %c0_2] : memref<32x64xf32, #tpu.memory_space<vmem>>, vector<32x64xf32>
    %cst = arith.constant dense<0.000000e+00> : vector<32x64xf32>
    %2 = tpu.matmul %0, %1, %cst {dimension_numbers = #tpu.dot_dimension_numbers<[1], [0], [0], [1], [0, 0, 1, 1], [], []>} : vector<32x32xf32>, vector<32x64xf32>, vector<32x64xf32> -> vector<32x64xf32>
    %cst_3 = arith.constant dense<0xFF800000> : vector<64xf32>
    %3 = vector.multi_reduction <maximumf>, %2, %cst_3 [0] : vector<32x64xf32> to vector<64xf32>
    %4 = vector.shape_cast %3 : vector<64xf32> to vector<1x64xf32>
    %5 = vector.broadcast %4 : vector<1x64xf32> to vector<32x64xf32>
    %6 = arith.subf %2, %5 : vector<32x64xf32>
    %7 = math.exp %6 : vector<32x64xf32>
    %cst_4 = arith.constant dense<0.000000e+00> : vector<64xf32>
    %8 = vector.multi_reduction <add>, %7, %cst_4 [0] : vector<32x64xf32> to vector<64xf32>
    %9 = vector.shape_cast %8 : vector<64xf32> to vector<1x64xf32>
    %cst_5 = arith.constant 1.000000e+00 : f32
    %10 = vector.broadcast %cst_5 : f32 to vector<1x64xf32>
    %11 = arith.divf %10, %9 : vector<1x64xf32>
    %12 = vector.broadcast %11 : vector<1x64xf32> to vector<32x64xf32>
    %13 = arith.mulf %7, %12 : vector<32x64xf32>
    %c0_6 = arith.constant 0 : index
    %c0_7 = arith.constant 0 : index
    %14 = vector.load %arg2[%c0_6, %c0_7] : memref<32x64xf32, #tpu.memory_space<vmem>>, vector<32x64xf32>
    %15 = arith.mulf %13, %14 : vector<32x64xf32>
    %c0_8 = arith.constant 0 : index
    %c0_9 = arith.constant 0 : index
    %16 = vector.load %arg4[%c0_8, %c0_9] : memref<32x32xf32, #tpu.memory_space<vmem>>, vector<32x32xf32>
    %cst_10 = arith.constant dense<0.000000e+00> : vector<32x64xf32>
    %17 = tpu.matmul %16, %15, %cst_10 {dimension_numbers = #tpu.dot_dimension_numbers<[1], [0], [0], [1], [0, 0, 1, 1], [], []>} : vector<32x32xf32>, vector<32x64xf32>, vector<32x64xf32> -> vector<32x64xf32>
    %c0_11 = arith.constant 0 : index
    %c0_12 = arith.constant 0 : index
    %18 = vector.load %arg5[%c0_11, %c0_12] : memref<64x64xf32, #tpu.memory_space<vmem>>, vector<64x64xf32>
    %cst_13 = arith.constant dense<0.000000e+00> : vector<32x64xf32>
    %19 = tpu.matmul %17, %18, %cst_13 {dimension_numbers = #tpu.dot_dimension_numbers<[1], [0], [0], [1], [0, 0, 1, 1], [], []>} : vector<32x64xf32>, vector<64x64xf32>, vector<32x64xf32> -> vector<32x64xf32>
    %c0_14 = arith.constant 0 : index
    %c0_15 = arith.constant 0 : index
    %20 = vector.load %arg6[%c0_14, %c0_15] : memref<1x64xf32, #tpu.memory_space<vmem>>, vector<1x64xf32>
    %21 = vector.broadcast %20 : vector<1x64xf32> to vector<32x64xf32>
    %22 = arith.addf %19, %21 : vector<32x64xf32>
    %c0_16 = arith.constant 0 : index
    %c0_17 = arith.constant 0 : index
    %23 = vector.load %arg7[%c0_16, %c0_17] : memref<32x64xf32, #tpu.memory_space<vmem>>, vector<32x64xf32>
    tpu.vector_store %arg7[%c0_16, %c0_17], %22 {strides = array<i32>} : memref<32x64xf32, #tpu.memory_space<vmem>>, vector<32x64xf32>,
    return
  }
  func.func @transform_0(%arg0: i32) -> (i32, i32) {
    %c0_i32 = arith.constant 0 : i32
    %c0_i32_0 = arith.constant 0 : i32
    %c0_i32_1 = arith.constant 0 : i32
    return %c0_i32, %c0_i32_0 : i32, i32
  }
  func.func @transform_1(%arg0: i32) -> (i32, i32) {
    %c0_i32 = arith.constant 0 : i32
    %c0_i32_0 = arith.constant 0 : i32
    %c0_i32_1 = arith.constant 0 : i32
    return %c0_i32, %c0_i32_0 : i32, i32
  }
  func.func @transform_2(%arg0: i32) -> (i32, i32) {
    %c0_i32 = arith.constant 0 : i32
    %c0_i32_0 = arith.constant 0 : i32
    %c0_i32_1 = arith.constant 0 : i32
    return %c0_i32, %c0_i32_0 : i32, i32
  }
  func.func @transform_3(%arg0: i32) -> (i32, i32) {
    %c0_i32 = arith.constant 0 : i32
    %c0_i32_0 = arith.constant 0 : i32
    %c0_i32_1 = arith.constant 0 : i32
    return %c0_i32, %c0_i32_0 : i32, i32
  }
  func.func @transform_4(%arg0: i32) -> (i32, i32) {
    %c0_i32 = arith.constant 0 : i32
    %c0_i32_0 = arith.constant 0 : i32
    %c0_i32_1 = arith.constant 0 : i32
    return %c0_i32, %c0_i32_0 : i32, i32
  }
  func.func @transform_5(%arg0: i32) -> (i32, i32) {
    %c0_i32 = arith.constant 0 : i32
    %c0_i32_0 = arith.constant 0 : i32
    %c0_i32_1 = arith.constant 0 : i32
    return %c0_i32, %c0_i32_0 : i32, i32
  }
  func.func @transform_6(%arg0: i32) -> (i32, i32) {
    %c0_i32 = arith.constant 0 : i32
    %c0_i32_0 = arith.constant 0 : i32
    %c0_i32_1 = arith.constant 0 : i32
    return %c0_i32, %c0_i32_0 : i32, i32
  }
}

</mosaic_0001>

<bundles_post_ra>
// kernel: tpu_custom_call.1
= control target key start
LH: loop header
LB: loop body
LE: loop exit
PB: predicated region body
PF: predicated region fallthrough
CT: control target
= control target key end

     0   :  { %11 = vsyncpa [#allocation3], 0  ;;  %s830_s0 = inlined_call_operand.hbm [shape: f32[32,64], index: 0, kind: input, shape index: {}]   ;;  %s831_s1 = inlined_call_operand.hbm [shape: f32[32,64], index: 1, kind: input, shape index: {}]   ;;  %s832_s2 = inlined_call_operand.hbm [shape: f32[32,32], index: 2, kind: input, shape index: {}]   ;;  %s833_s3 = inlined_call_operand.hbm [shape: f32[32,32], index: 3, kind: input, shape index: {}]   ;;  %s834_s4 = inlined_call_operand.hbm [shape: f32[64,64], index: 4, kind: input, shape index: {}]   ;;  %s835_s5 = inlined_call_operand.vmem [shape: f32[1,64], index: 5, kind: input, shape index: {}]   ;;  %s836_s6 = inlined_call_operand.hbm [shape: f32[32,64], index: 6, kind: output, shape index: {}]  }
   0x1   :  { %12 = vsyncpa [#allocation6], 0 }
   0x2   :  { %13 = vsyncpa [#allocation9], 0 }
   0x3   :  { %14 = vsyncpa [#allocation4], 0  ;;  %s724_s21 = smov [#allocation5]   ;;  %s725_s23 = smov [#allocation8]  }
   0x4   :  { %s32_s22 = sshll.u32 %s724_s21, 4  ;;  %s56_s24 = sshll.u32 %s725_s23, 4  ;;  %s33_s22 = int_to_ptr.vmem [resolvable:$true] %s32_s22  ;;  %s57_s24 = int_to_ptr.vmem [resolvable:$true] %s56_s24 }
   0x5   :  { %s604_s25 = scalar_lea.vmem %s33_s22, 512  ;;  %p609_p1 = scmp.lt.s32.totalorder %s33_s22, %s33_s22 }
   0x6   :  { %p605_p0 = scmp.ne.s32.totalorder %s33_s22, %s604_s25  ;;  %p610_p2 = scmp.lt.s32.totalorder %s604_s25, %s604_s25 }
   0x8   :  { %p611_p3 = por %p610_p2, %p609_p1 }
   0xa   :  { %p612_p4 = pnand %p611_p3, %p605_p0 }
   0xc   :  { %615 = shalt.err (!%p612_p4)
}
   0xd   :  { %s726_s26 = smov 128   ;;  %s727_s27 = smov 8  }
   0xe   :  { %38 = dma.hbm_to_vmem [thread:$0]  %s831_s1, 512, %s33_s22, [#allocation6], %s726_s26, %s726_s26, %s727_s27  }
   0xf   :  { %s624_s30 = scalar_lea.vmem %s57_s24, 512  ;;  %p629_p6 = scmp.lt.s32.totalorder %s57_s24, %s57_s24 }
  0x10   :  { %p625_p5 = scmp.ne.s32.totalorder %s57_s24, %s624_s30  ;;  %p630_p7 = scmp.lt.s32.totalorder %s624_s30, %s624_s30 }
  0x12   :  { %p631_p8 = por %p630_p7, %p629_p6 }
  0x14   :  { %p632_p9 = pnand %p631_p8, %p625_p5 }
  0x16   :  { %635 = shalt.err (!%p632_p9)
}
  0x17   :  { %62 = dma.hbm_to_vmem [thread:$0]  %s833_s3, 512, %s57_s24, [#allocation9], %s726_s26, %s726_s26, %s727_s27  }
  0x18   :  { %s728_s9 = smov [#allocation2]   ;;  %s729_s11 = smov [#allocation7]  }
  0x19   :  { %s20_s10 = sshll.u32 %s728_s9, 4  ;;  %s44_s12 = sshll.u32 %s729_s11, 4  ;;  %s21_s10 = int_to_ptr.vmem [resolvable:$true] %s20_s10  ;;  %s45_s12 = int_to_ptr.vmem [resolvable:$true] %s44_s12 }
  0x1a   :  { %s644_s1 = scalar_lea.vmem %s21_s10, 512  ;;  %p649_p11 = scmp.lt.s32.totalorder %s21_s10, %s21_s10 }
  0x1b   :  { %p645_p10 = scmp.ne.s32.totalorder %s21_s10, %s644_s1  ;;  %p650_p12 = scmp.lt.s32.totalorder %s644_s1, %s644_s1 }
  0x1d   :  { %p651_p13 = por %p650_p12, %p649_p11 }
  0x1f   :  { %p652_p0 = pnand %p651_p13, %p645_p10 }
  0x21   :  { %655 = shalt.err (!%p652_p0)
}
  0x22   :  { %26 = dma.hbm_to_vmem [thread:$0]  %s830_s0, 512, %s21_s10, [#allocation3], %s726_s26, %s726_s26, %s727_s27  }
  0x23   :  { %s664_s3 = scalar_lea.vmem %s45_s12, 512  ;;  %p669_p2 = scmp.lt.s32.totalorder %s45_s12, %s45_s12 }
  0x24   :  { %p665_p1 = scmp.ne.s32.totalorder %s45_s12, %s664_s3  ;;  %p670_p3 = scmp.lt.s32.totalorder %s664_s3, %s664_s3 }
  0x26   :  { %p671_p4 = por %p670_p3, %p669_p2 }
  0x28   :  { %p672_p5 = pnand %p671_p4, %p665_p1 }
  0x2a   :  { %675 = shalt.err (!%p672_p5)
}
  0x2b   :  { %50 = dma.hbm_to_vmem [thread:$0]  %s832_s2, 512, %s45_s12, [#allocation6], %s726_s26, %s726_s26, %s727_s27  }
  0x2c   :  { %s730_s17 = smov [#allocation10]  }
  0x2d   :  { %s68_s18 = sshll.u32 %s730_s17, 4  ;;  %s69_s18 = int_to_ptr.vmem [resolvable:$true] %s68_s18 }
  0x2e   :  { %s684_s19 = scalar_lea.vmem %s69_s18, 1024  ;;  %p689_p7 = scmp.lt.s32.totalorder %s69_s18, %s69_s18 }
  0x2f   :  { %p685_p6 = scmp.ne.s32.totalorder %s69_s18, %s684_s19  ;;  %p690_p8 = scmp.lt.s32.totalorder %s684_s19, %s684_s19 }
  0x31   :  { %p691_p9 = por %p690_p8, %p689_p7 }
  0x33   :  { %p692_p10 = pnand %p691_p9, %p685_p6 }
  0x35   :  { %695 = shalt.err (!%p692_p10)
}
  0x36   :  { %74 = dma.hbm_to_vmem [thread:$0]  %s834_s4, 1024, %s69_s18, [#allocation9], %s726_s26, %s726_s26, %s727_s27  }
  0x37   :  { %716 = dma.done.wait [#allocation3], 512  }
  0x38   :  { %717 = vsyncadd [#allocation3], 4294966784 }
  0x39   :  { %718 = dma.done.wait [#allocation6], 1024  }
  0x3a   :  { %719 = vsyncadd [#allocation6], 4294966272 }
  0x3b   :  { %720 = dma.done.wait [#allocation9], 1536  }
  0x3c   :  { %721 = vsyncadd [#allocation9], 4294965760  ;;  %vm100_vm0 = vcmask 261120   ;;  %v99_v0 = vld [vmem:[#allocation2 + $0x18] sm:$0xff]  ;;  %v98_v1 = vld [vmem:[#allocation2 + $0x10] sm:$0xff]  ;;  %vm198_vm1 = vcmask 523264  }
  0x3d   :  { %528 = vmatprep.subr.mxu1 %v99_v0  ;;  %v92_v2 = vld [vmem:[#allocation7] sm:$0xff]  ;;  %v97_v3 = vld [vmem:[#allocation2 + $0x8] sm:$0xff]  ;;  %v94_v6 = vld [vmem:[#allocation7 + $0x10] sm:$0xff]  ;;  %s731_s21 = smov [#allocation11]  }
  0x3e   :  { %529 = vmatpush3.msra.mxu1 %v99_v0  ;;  %536 = vmatprep.mubr.msk.f32.mxu1 %vm100_vm0, %v92_v2  ;;  %v96_v4 = vld [vmem:[#allocation2] sm:$0xff]  ;;  %v93_v5 = vld [vmem:[#allocation7 + $0x8] sm:$0xff]  ;;  %v95_v7 = vld [vmem:[#allocation7 + $0x18] sm:$0xff]  ;;  %s473_s22 = sshll.u32 %s731_s21, 4  ;;  %s474_s22 = int_to_ptr.vmem [resolvable:$true] %s473_s22 }
  0x3f   :  { %530 = vmatprep.subr.mxu1 %v98_v1  ;;  %v251_v8 = vld [vmem:[#allocation8] sm:$0xff]  ;;  %v359_v9 = vld [vmem:[#allocation10 + $0x38] sm:$0xff]  ;;  %v358_v10 = vld [vmem:[#allocation10 + $0x30] sm:$0xff]  ;;  %p701_p12 = scmp.lt.s32.totalorder %s474_s22, %s474_s22 }
  0x40   :  { %531 = vmatpush3.msra.mxu1 %v98_v1  ;;  %556 = vmatprep.subr.mxu0 %v359_v9  ;;  %v357_v11 = vld [vmem:[#allocation10 + $0x28] sm:$0xff]  ;;  %v356_v12 = vld [vmem:[#allocation10 + $0x20] sm:$0xff]  ;;  %v355_v13 = vld [vmem:[#allocation10 + $0x18] sm:$0xff] }
  0x41   :  { %532 = vmatprep.subr.mxu1 %v97_v3  ;;  %557 = vmatpush3.msra.mxu0 %v359_v9  ;;  %v354_v14 = vld [vmem:[#allocation10 + $0x10] sm:$0xff]  ;;  %v246_v58 = vld [vmem:[#allocation5 + $0x18] sm:$0xff]  ;;  %v244_v0 = vld [vmem:[#allocation5 + $0x8] sm:$0xff] }
  0x42   :  { %533 = vmatpush3.msra.mxu1 %v97_v3  ;;  %558 = vmatprep.subr.mxu0 %v358_v10  ;;  %v245_v61 = vld [vmem:[#allocation5 + $0x10] sm:$0xff]  ;;  %v243_v3 = vld [vmem:[#allocation5] sm:$0xff]  ;;  %v353_v9 = vld [vmem:[#allocation10 + $0x8] sm:$0xff] }
  0x43   :  { %534 = vmatprep.subr.mxu1 %v96_v4  ;;  %559 = vmatpush3.msra.mxu0 %v358_v10  ;;  %v352_v10 = vld [vmem:[#allocation10] sm:$0xff] }
  0x44   :  { %535 = vmatpush3.msra.mxu1 %v96_v4  ;;  %560 = vmatprep.subr.mxu0 %v357_v11 }
  0x45   :  { %537 = vmatmul.mubr.msk.f32.vlgmr.msra.gmra.mxu1 %vm100_vm0, %v93_v5  ;;  %561 = vmatpush3.msra.mxu0 %v357_v11 }
  0x46   :  { %539 = vmatprep.mubr.msk.f32.mxu1 %vm100_vm0, %v94_v6  ;;  %562 = vmatprep.subr.mxu0 %v356_v12  ;;  %v252_v6 = vld [vmem:[#allocation8 + $0x8] sm:$0xff] }
  0x47   :  { %563 = vmatpush3.msra.mxu0 %v356_v12 }
  0x48   :  { %564 = vmatprep.subr.mxu0 %v355_v13 }
  0x49   :  { %540 = vmatmul.mubr.msk.f32.gmra.mxu1 %vm100_vm0, %v95_v7  ;;  %565 = vmatpush3.msra.mxu0 %v355_v13  ;;  %v253_v7 = vld [vmem:[#allocation8 + $0x10] sm:$0xff] }
  0x4a   :  { %550 = vmatprep.mubr.msk.f32.mxu1 %vm100_vm0, %v251_v8  ;;  %566 = vmatprep.subr.mxu0 %v354_v14  ;;  %v254_v8 = vld [vmem:[#allocation8 + $0x18] sm:$0xff] }
  0x4b   :  { %567 = vmatpush3.msra.mxu0 %v354_v14 }
  0x4c   :  { %568 = vmatprep.subr.mxu0 %v353_v9 }
  0x4d   :  { %569 = vmatpush3.msra.mxu0 %v353_v9 }
  0x4e   :  { %570 = vmatprep.subr.mxu0 %v352_v10 }
  0x4f   :  { %571 = vmatpush3.msra.mxu0 %v352_v10 }
 0x105   :  { %v538_v15 = vpop.f32.mrf.mxu1 }
 0x106   :  { %v200_v20 = vsel %vm198_vm1, %v538_v15, -inf }
 0x107   :  { %v179_v16 = vpop.f32.mrf.mxu1 }
 0x108   :  { %v199_v18 = vsel %vm198_vm1, %v179_v16, -inf }
 0x109   :  { %v541_v17 = vpop.f32.mrf.mxu1  ;;  %v203_v23 = vmax.f32 %v199_v18, %v200_v20 }
 0x10a   :  { %v202_v21 = vsel %vm198_vm1, %v541_v17, -inf }
 0x10b   :  { %v189_v19 = vpop.f32.mrf.mxu1 }
 0x10c   :  { %v201_v22 = vsel %vm198_vm1, %v189_v19, -inf }
 0x10d   :  { %v204_v24 = vmax.f32 %v201_v22, %v202_v21 }
 0x10f   :  { %v205_v25 = vmax.f32 %v203_v23, %v204_v24 }
 0x111   :  { %v206_v26 = vrot.slane %v205_v25, 4 }
 0x113   :  { %v207_v27 = vmax.f32 %v205_v25, %v206_v26 }
 0x115   :  { %v208_v28 = vrot.slane %v207_v27, 2 }
 0x117   :  { %v209_v29 = vmax.f32 %v207_v27, %v208_v28 }
 0x119   :  { %v210_v30 = vrot.slane %v209_v29, 1 }
 0x11b   :  { %v211_v31 = vmax.f32 %v209_v29, %v210_v30 }
 0x11d   :  { %v212_v32 = vsub.f32 %v179_v16, %v211_v31  ;;  %v213_v33 = vsub.f32 %v538_v15, %v211_v31  ;;  %v214_v34 = vsub.f32 %v189_v19, %v211_v31  ;;  %v215_v35 = vsub.f32 %v541_v17, %v211_v31  ;;  %v495_v15 = vld [vmem:[%s835_s5] ss:$0 sm:$0xff]  ;;  %s696_s5 = scalar_lea.vmem %s474_s22, 512 }
 0x11e   :  { %p697_p11 = scmp.ne.s32.totalorder %s474_s22, %s696_s5  ;;  %p702_p13 = scmp.lt.s32.totalorder %s696_s5, %s696_s5 }
 0x11f   :  { %v216_v36 = vmul.f32 1.442695, %v212_v32  ;;  %v218_v37 = vmul.f32 1.442695, %v213_v33  ;;  %v220_v38 = vmul.f32 1.442695, %v214_v34 }
 0x120   :  { %v222_v39 = vmul.f32 1.442695, %v215_v35  ;;  %p703_p0 = por %p702_p13, %p701_p12 }
 0x121   :  { %586 = vpow2.f32 %v216_v36 }
 0x122   :  { %588 = vpow2.f32 %v218_v37  ;;  %p704_p1 = pnand %p703_p0, %p697_p11 }
 0x123   :  { %590 = vpow2.f32 %v220_v38 }
 0x124   :  { %592 = vpow2.f32 %v222_v39 }
 0x12e   :  { %v587_v40 = vpop.eup %586 }
 0x12f   :  { %v589_v41 = vpop.eup %588  ;;  %v224_v42 = vsel %vm198_vm1, %v587_v40, 0.0 }
 0x130   :  { %v591_v43 = vpop.eup %590  ;;  %v225_v44 = vsel %vm198_vm1, %v589_v41, 0.0 }
 0x131   :  { %v593_v45 = vpop.eup %592  ;;  %v226_v46 = vadd.f32 %v225_v44, %v224_v42  ;;  %v227_v47 = vsel %vm198_vm1, %v591_v43, 0.0 }
 0x132   :  { %v229_v49 = vsel %vm198_vm1, %v593_v45, 0.0 }
 0x133   :  { %v228_v48 = vadd.f32 %v227_v47, %v226_v46 }
 0x135   :  { %v230_v50 = vadd.f32 %v229_v49, %v228_v48 }
 0x137   :  { %v231_v51 = vrot.slane %v230_v50, 4 }
 0x139   :  { %v232_v52 = vadd.f32 %v231_v51, %v230_v50 }
 0x13b   :  { %v233_v53 = vrot.slane %v232_v52, 2 }
 0x13d   :  { %v234_v54 = vadd.f32 %v233_v53, %v232_v52 }
 0x13f   :  { %v235_v55 = vrot.slane %v234_v54, 1 }
 0x141   :  { %v236_v56 = vadd.f32 %v235_v55, %v234_v54 }
 0x143   :  { %594 = vrcp.f32 %v236_v56 }
 0x150   :  { %v595_v57 = vpop.eup %594 }
 0x151   :  { %v242_v59 = vmul.f32 %v595_v57, %v593_v45  ;;  %v241_v60 = vmul.f32 %v595_v57, %v591_v43  ;;  %v240_v63 = vmul.f32 %v595_v57, %v589_v41  ;;  %v239_v2 = vmul.f32 %v595_v57, %v587_v40 }
 0x153   :  { %v250_v62 = vmul.f32 %v246_v58, %v242_v59  ;;  %v249_v1 = vmul.f32 %v245_v61, %v241_v60  ;;  %v248_v4 = vmul.f32 %v244_v0, %v240_v63  ;;  %v247_v5 = vmul.f32 %v243_v3, %v239_v2 }
 0x155   :  { %542 = vmatprep.subr.mxu1 %v250_v62 }
 0x156   :  { %543 = vmatpush3.msra.mxu1 %v250_v62 }
 0x157   :  { %544 = vmatprep.subr.mxu1 %v249_v1 }
 0x158   :  { %545 = vmatpush3.msra.mxu1 %v249_v1 }
 0x159   :  { %546 = vmatprep.subr.mxu1 %v248_v4 }
 0x15a   :  { %547 = vmatpush3.msra.mxu1 %v248_v4 }
 0x15b   :  { %548 = vmatprep.subr.mxu1 %v247_v5 }
 0x15c   :  { %549 = vmatpush3.msra.mxu1 %v247_v5 }
 0x15d   :  { %551 = vmatmul.mubr.msk.f32.vlgmr.msra.gmra.mxu1 %vm100_vm0, %v252_v6 }
 0x15e   :  { %553 = vmatprep.mubr.msk.f32.mxu1 %vm100_vm0, %v253_v7 }
 0x161   :  { %554 = vmatmul.mubr.msk.f32.gmra.mxu1 %vm100_vm0, %v254_v8 }
 0x21d   :  { %v552_v11 = vpop.f32.mrf.mxu1 }
 0x21f   :  { %v333_v12 = vpop.f32.mrf.mxu1 }
 0x220   :  { %572 = vmatprep.mubr.msk.f32.mxu0 %vm198_vm1, %v333_v12 }
 0x221   :  { %v555_v13 = vpop.f32.mrf.mxu1  ;;  %573 = vmatmul.mubr.msk.f32.vlgmr.msra.gmra.mxu0 %vm198_vm1, %v552_v11 }
 0x223   :  { %v343_v14 = vpop.f32.mrf.mxu1 }
 0x224   :  { %575 = vmatprep.mubr.msk.f32.mxu0 %vm198_vm1, %v343_v14 }
 0x225   :  { %576 = vmatmul.mubr.msk.f32.gmra.mxu0 %vm198_vm1, %v555_v13 }
 0x2e1   :  { %v574_v16 = vpop.f32.mrf.mxu0 }
 0x2e2   :  { %v451_v17 = vadd.f32 %v574_v16, %v495_v15 }
 0x2e3   :  { %v445_v18 = vpop.f32.mrf.mxu0 }
 0x2e4   :  { %465 = vst.msk [vmem:[#allocation11 + $0x8] sm:$0xff] %vm198_vm1, %v451_v17  ;;  %v446_v19 = vadd.f32 %v495_v15, %v445_v18 }
 0x2e5   :  { %v577_v20 = vpop.f32.mrf.mxu0 }
 0x2e6   :  { %464 = vst.msk [vmem:[#allocation11] sm:$0xff] %vm198_vm1, %v446_v19  ;;  %v461_v21 = vadd.f32 %v577_v20, %v495_v15 }
 0x2e7   :  { %v455_v22 = vpop.f32.mrf.mxu0 }
 0x2e8   :  { %467 = vst.msk [vmem:[#allocation11 + $0x18] sm:$0xff] %vm198_vm1, %v461_v21  ;;  %v456_v23 = vadd.f32 %v495_v15, %v455_v22 }
 0x2ea   :  { %466 = vst.msk [vmem:[#allocation11 + $0x10] sm:$0xff] %vm198_vm1, %v456_v23 }
 0x2eb   :  { %707 = shalt.err (!%p704_p1)
}
 0x2ec   :  { %479 = dma.vmem_to_hbm [thread:$0]  %s474_s22, 512, %s836_s6, [#allocation4], %s726_s26, %s726_s26, %s727_s27  }
 0x2ed   :  { %722 = dma.done.wait [#allocation4], 512  }
 0x2ee   :  { %723 = vsyncadd [#allocation4], 4294966784 }
 0x2ef   :  { %483 = vsyncpa [#allocation3], 1 }
 0x2f0   :  { %484 = vsyncpa [#allocation6], 1 }
 0x2f1   :  { %485 = vsyncpa [#allocation9], 1 }
 0x2f2   :  { %486 = vsyncpa [#allocation4], 1 }

</bundles_post_ra>
